<compile_context>
chip_gen: v7x
topology: tpu7x:2x2x1
jax: 0.10.0
libtpu: 0.0.40
codegen_flags: <defaults>
</compile_context>

<pallas_src>
import functools
import math

import numpy as np
import jax
import jax.numpy as jnp
from jax.experimental import pallas as pl
from jax.experimental.pallas import tpu as pltpu

# ---------------- small, deterministic configuration -------------------------
BATCH = 8
N_FEATURES = 8
X_POS = [[0, 1], [2, 3]]                  # n_vars = 2
S_POS = [[0, 1, 2, 3, 4, 5], [6, 7]]      # 2 hemispheres, last = time hemisphere
N_OUTPUTS = 2
N_ALPHAS = N_OUTPUTS * (N_OUTPUTS + 1) // 2
NODES = [32, 16]                          # trunk widths (n_layers = 2)
N_BETAS = [len(p) for p in X_POS]
N_DAT_COLS = 1 + sum(N_BETAS)             # intercept + all lagged regressors
TVPL_WIDTH = 8
NEURONS_WEIGHTS = [[TVPL_WIDTH]] * N_DAT_COLS
TIME_HEMI_PRIOR_VARIANCE = 0.5
VOL_HEMI_PRIOR_VARIANCE = 2.0

# TODO(synk): only single-layer TVPL architectures (len(archi) == 1, equal width)
# are implemented; deeper per-column TVPL stacks need one more packed matmul.
assert all(len(a) == 1 and a[0] == TVPL_WIDTH for a in NEURONS_WEIGHTS)
assert len(NEURONS_WEIGHTS) == N_DAT_COLS


def _round_up(x, m):
    return ((x + m - 1) // m) * m


# ---------------- derived packing constants -----------------------------------
N_GROUPS = 2 * len(S_POS)                               # 4 packed trunks
TRUNK0 = N_GROUPS * NODES[0]                            # 128
TRUNKL = N_GROUPS * NODES[-1]                           # 64
N_HEADS = len(S_POS) * (N_OUTPUTS * N_DAT_COLS + N_ALPHAS)   # 26 TVPL heads
DAT_LANES = N_OUTPUTS * N_DAT_COLS                      # 10 ([dat | dat], output-major)
B_LANES = len(S_POS) * N_OUTPUTS * N_DAT_COLS           # 20 per-hemi beta lanes
C_LANES = len(S_POS) * N_OUTPUTS * N_OUTPUTS            # 8  per-hemi cholesky lanes
HEAD_HID = _round_up(N_HEADS * TVPL_WIDTH, 128)         # 256 (lane-multiple padded)
HOUT_W = _round_up(B_LANES + C_LANES, 8)                # 32
S_AUG_W = _round_up(N_FEATURES + 1, 8)                  # 16  ([S | 1 | 0-pad])
W_IN_W = TRUNK0 + _round_up(DAT_LANES, 16)              # 144 (trunk + dat lanes)
OUT_W = 128                                             # single lane-dense output
CONST_G_W = OUT_W + 2 * N_OUTPUTS ** 3                  # 144
FY_ROW = _round_up(HOUT_W, 8)                           # 32
FP_ROW = _round_up(FY_ROW + DAT_LANES, 8)               # 48
CONST_ROWS = _round_up(FP_ROW + N_OUTPUTS ** 3, 8)      # 56

assert N_OUTPUTS + N_OUTPUTS ** 2 + B_LANES + C_LANES <= OUT_W

VMEM_SPEC = pl.BlockSpec(memory_space=pltpu.MemorySpace.VMEM)


# ---------------- the single fused Pallas kernel ------------------------------
def _fused_kernel(*refs, n_hidden):
    """Whole VARNN forward.
    Inputs : s_aug, w_in, w_first, w_hid*n_hidden, wh1, wh2, bias_slab, const_slab
    Output : one lane-dense (B, 128) slab = [y_hat | precision | betas | chol | 0]"""
    s_ref, w_in_ref, w_first_ref = refs[0:3]
    w_hid_refs = refs[3:3 + n_hidden]
    wh1_ref, wh2_ref, bias_ref, const_ref, out_ref = refs[3 + n_hidden:]

    f32 = jnp.float32
    O = N_OUTPUTS

    def mm(a, b):
        return jnp.dot(a, b, preferred_element_type=f32)

    def brow(idx, width):
        # biases live on sublane-aligned rows (stride 8) of one slab
        return bias_ref[idx * 8:idx * 8 + 1, 0:width]            # (1, width)

    s_aug = s_ref[...]                                           # (B,16) = [S | 1 | 0]

    # --- trunk input layer + dat replication in ONE matmul (bias via ones lane)
    h0 = mm(s_aug, w_in_ref[...])                                # (B, 144)
    x = jnp.maximum(h0[:, 0:TRUNK0], 0.0)                        # 4 packed trunks (B,128)
    dat_rep = h0[:, TRUNK0:TRUNK0 + DAT_LANES]                   # (B,10) raw regressors

    x = jnp.maximum(mm(x, w_first_ref[...]) + brow(0, TRUNK0), 0.0)
    for l in range(n_hidden):
        w = N_GROUPS * NODES[l + 1]
        x = jnp.maximum(mm(x, w_hid_refs[l][...]) + brow(1 + l, w), 0.0)   # (B,64)

    # --- all TVPL heads fused, padded to lane multiples; chol placement folded
    t = jnp.maximum(mm(x, wh1_ref[...]) + brow(1 + n_hidden, HEAD_HID), 0.0)  # (B,256)
    hout = mm(t, wh2_ref[...]) + brow(2 + n_hidden, HOUT_W)                   # (B,32)

    # abs on cholesky-diagonal lanes (pure VPU select)
    lane = jax.lax.broadcasted_iota(jnp.int32, hout.shape, 1)
    diag = lane < 0                                              # all-False start
    for h in range(len(S_POS)):
        for r in range(O):
            diag = diag | (lane == B_LANES + h * O * O + r * (O + 1))
    hfix = jnp.where(diag, jnp.abs(hout), hout)

    # hemisphere reduction of betas on the VPU (lane slices + add, no matmul)
    betas_red = hfix[:, 0:DAT_LANES]
    for h in range(1, len(S_POS)):
        betas_red = betas_red + hfix[:, h * DAT_LANES:(h + 1) * DAT_LANES]

    # one matmul: place betas/chol into their output lanes AND emit
    # [C_red @ ea | C_red @ eb] (hemisphere sum + lane expansion for precision)
    gout = mm(hfix, const_ref[0:HOUT_W, 0:CONST_G_W])            # (B, 144)
    out_bc = gout[:, 0:OUT_W]                                    # betas/chol placed
    cab = gout[:, OUT_W:CONST_G_W]                               # (B, 16)
    pp = cab[:, 0:O ** 3] * cab[:, O ** 3:2 * O ** 3]            # C[r,k]*C[c,k]

    prod_y = dat_rep * betas_red                                 # (B, 10)

    # final lane-dense assembly: y_hat -> lanes 0:2, precision -> lanes 2:6
    # (the sums over d and k are the matmul contractions); one unmasked store.
    out_ref[...] = (out_bc
                    + mm(prod_y, const_ref[FY_ROW:FY_ROW + DAT_LANES, 0:OUT_W])
                    + mm(pp, const_ref[FP_ROW:FP_ROW + O ** 3, 0:OUT_W]))


# ---------------- parameter init (deterministic, PyTorch-Linear-like) --------
def init_linear(key, fan_in, fan_out):
    kw, kb = jax.random.split(key)
    bound = 1.0 / math.sqrt(fan_in)
    w = jax.random.uniform(kw, (fan_in, fan_out), jnp.float32, -bound, bound)
    b = jax.random.uniform(kb, (fan_out,), jnp.float32, -bound, bound)
    return w, b


def init_group(key, hemi_in, n_heads):
    n_hidden = len(NODES) - 1
    keys = iter(jax.random.split(key, 2 + n_hidden + 2 * n_heads))
    p = {
        'input': init_linear(next(keys), hemi_in, NODES[0]),
        'first': init_linear(next(keys), NODES[0], NODES[0]),
        'hidden': [init_linear(next(keys), NODES[i], NODES[i + 1])
                   for i in range(n_hidden)],
    }
    w1s, b1s, w2s, b2s = [], [], [], []
    for _ in range(n_heads):
        w1, b1 = init_linear(next(keys), NODES[-1], TVPL_WIDTH)
        w2, b2 = init_linear(next(keys), TVPL_WIDTH, 1)
        w1s.append(w1); b1s.append(b1); w2s.append(w2); b2s.append(b2)
    p['heads'] = (jnp.stack(w1s), jnp.stack(b1s), jnp.stack(w2s),
                  jnp.stack(b2s)[:, 0])
    return p


def init_params(key):
    params = []
    for h in range(len(S_POS)):
        kb, ka, key = jax.random.split(key, 3)
        params.append({
            'betas': init_group(kb, len(S_POS[h]), N_OUTPUTS * N_DAT_COLS),
            'alphas': init_group(ka, len(S_POS[h]), N_ALPHAS),
        })
    return params


# ---------------- pack per-module weights into fused, lane-dense slabs --------
def pack_params(params):
    O, D, A = N_OUTPUTS, N_DAT_COLS, TVPL_WIDTH
    H = len(S_POS)
    n0, nl = NODES[0], NODES[-1]
    n_hidden = len(NODES) - 1
    tril_pos = [r * O + c for r in range(O) for c in range(r + 1)]

    w_in = np.zeros((S_AUG_W, W_IN_W), np.float32)
    w_first = np.zeros((TRUNK0, TRUNK0), np.float32)
    w_hid = [np.zeros((N_GROUPS * NODES[l], N_GROUPS * NODES[l + 1]), np.float32)
             for l in range(n_hidden)]
    wh1 = np.zeros((TRUNKL, HEAD_HID), np.float32)
    wh2 = np.zeros((HEAD_HID, HOUT_W), np.float32)
    bias = np.zeros(((3 + n_hidden) * 8, HEAD_HID), np.float32)   # 8-row strided slab

    groups = [(h, k) for h in range(H) for k in ('betas', 'alphas')]
    for g, (h, kind) in enumerate(groups):
        grp = params[h][kind]
        # sqrt-prior scalings folded into the packed input weights
        scale = 1.0 / math.sqrt(len(S_POS[h]))
        if H > 1 and h == H - 1:
            scale *= math.sqrt(TIME_HEMI_PRIOR_VARIANCE)
        if kind == 'alphas':
            scale *= math.sqrt(VOL_HEMI_PRIOR_VARIANCE)

        wi, bi = (np.asarray(a) for a in grp['input'])
        for local, f in enumerate(S_POS[h]):
            w_in[f, g * n0:(g + 1) * n0] = scale * wi[local]
        w_in[N_FEATURES, g * n0:(g + 1) * n0] = bi               # bias via ones lane

        wf, bf = (np.asarray(a) for a in grp['first'])
        w_first[g * n0:(g + 1) * n0, g * n0:(g + 1) * n0] = wf
        bias[0, g * n0:(g + 1) * n0] = bf

        for l in range(n_hidden):
            wl, bl = (np.asarray(a) for a in grp['hidden'][l])
            w_hid[l][g * NODES[l]:(g + 1) * NODES[l],
                     g * NODES[l + 1]:(g + 1) * NODES[l + 1]] = wl
            bias[(1 + l) * 8, g * NODES[l + 1]:(g + 1) * NODES[l + 1]] = bl

    # TVPL heads: head q reads its trunk group's lanes and writes output column
    # `col` of hout; alphas heads are routed straight into their cholesky slot.
    head_list = []
    for h in range(H):
        for j in range(O * D):
            q = h * O * D + j
            head_list.append((q, 2 * h, params[h]['betas']['heads'], j, q))
    for h in range(H):
        for i in range(N_ALPHAS):
            q = H * O * D + h * N_ALPHAS + i
            col = B_LANES + h * O * O + tril_pos[i]
            head_list.append((q, 2 * h + 1, params[h]['alphas']['heads'], i, col))

    for q, g, heads_p, j, col in head_list:
        hw1, hb1, hw2, hb2 = (np.asarray(a) for a in heads_p)
        wh1[g * nl:(g + 1) * nl, q * A:(q + 1) * A] = hw1[j]
        bias[(1 + n_hidden) * 8, q * A:(q + 1) * A] = hb1[j]
        wh2[q * A:(q + 1) * A, col] = hw2[j, :, 0]
        bias[(2 + n_hidden) * 8, col] = hb2[j]

    # dat = [1, S[:, X_POS...]] replicated per output, produced by the input matmul
    xflat = [f for grpx in X_POS for f in grpx]
    for o in range(O):
        w_in[N_FEATURES, TRUNK0 + o * D] = 1.0                   # intercept
        for d in range(1, D):
            w_in[xflat[d - 1], TRUNK0 + o * D + d] = 1.0

    # ---- constant slab -------------------------------------------------------
    # rows 0:32 (G)   : lanes 0:128 place betas/chol into the packed output,
    #                   lanes 128:144 = [chred@ea | chred@eb] (precision prep)
    # rows 32:42 (F_y): sum_d (dat*betas_red) -> y_hat lanes 0:2
    # rows 48:56 (F_p): sum_k C[r,k]C[c,k]    -> precision lanes 2:6
    OOO = O ** 3
    const = np.zeros((CONST_ROWS, CONST_G_W), np.float32)
    for j in range(B_LANES):
        const[j, O + O * O + j] = 1.0                            # betas -> lanes 6:26
    for p in range(C_LANES):
        const[B_LANES + p, O + O * O + B_LANES + p] = 1.0        # chol  -> lanes 26:34
    chred = np.zeros((C_LANES, O * O), np.float32)
    for h in range(H):
        for p in range(O * O):
            chred[h * O * O + p, p] = 1.0
    ea = np.zeros((O * O, OOO), np.float32)
    eb = np.zeros((O * O, OOO), np.float32)
    for r in range(O):
        for c in range(O):
            for k in range(O):
                m = (r * O + c) * O + k
                ea[r * O + k, m] = 1.0
                eb[c * O + k, m] = 1.0
    const[B_LANES:B_LANES + C_LANES, OUT_W:OUT_W + OOO] = chred @ ea
    const[B_LANES:B_LANES + C_LANES, OUT_W + OOO:OUT_W + 2 * OOO] = chred @ eb
    for o in range(O):
        for d in range(D):
            const[FY_ROW + o * D + d, o] = 1.0
    for m in range(OOO):
        const[FP_ROW + m, O + m // O] = 1.0

    packed = {'w_in': w_in, 'w_first': w_first, 'w_hid': w_hid,
              'wh1': wh1, 'wh2': wh2, 'bias': bias, 'const': const}
    # TODO(synk): on v6e/v7x cast the big weight slabs to bfloat16 (MXU-native,
    # halves weight DMA bytes, keep preferred_element_type=f32); kept f32 here so
    # the same script is exact on v5e's f32-only VPU path.
    return jax.tree_util.tree_map(jnp.asarray, packed)


# ---------------- forward pass (single fused pallas_call) ---------------------
def varnn_forward(S, packed):
    batch = S.shape[0]
    H, O, D = len(S_POS), N_OUTPUTS, N_DAT_COLS
    n_hidden = len(NODES) - 1

    s_aug = jnp.concatenate(
        [S.astype(jnp.float32),
         jnp.ones((batch, 1), jnp.float32),
         jnp.zeros((batch, S_AUG_W - N_FEATURES - 1), jnp.float32)], axis=1)

    inputs = [s_aug, packed['w_in'], packed['w_first'], *packed['w_hid'],
              packed['wh1'], packed['wh2'], packed['bias'], packed['const']]

    # TODO(synk): for a real workload with many rows (time steps / MC draws),
    # add a grid over the row axis (128-512 row tiles, weight BlockSpecs whose
    # index_maps return (0, 0) so weights stay resident, and
    # dimension_semantics=("parallel",) so v7x's two TensorCores split it);
    # at B=8 one launch is latency-optimal.
    out = pl.pallas_call(
        functools.partial(_fused_kernel, n_hidden=n_hidden),
        out_shape=jax.ShapeDtypeStruct((batch, OUT_W), jnp.float32),
        in_specs=[VMEM_SPEC] * len(inputs),
        out_specs=VMEM_SPEC,
    )(*inputs)

    # lane-dense packed output -> individual results (free layout plumbing)
    y_hat = out[:, 0:O]
    precision = out[:, O:O + O * O].reshape(batch, O, O)
    betas_flat = out[:, O + O * O:O + O * O + B_LANES]
    chol_flat = out[:, O + O * O + B_LANES:O + O * O + B_LANES + C_LANES]
    betas_stacked = jnp.transpose(betas_flat.reshape(batch, H, O, D), (0, 3, 2, 1))
    chol_stacked = jnp.transpose(chol_flat.reshape(batch, H, O, O), (0, 2, 3, 1))
    v = []  # vsn disabled
    return y_hat, precision, betas_stacked, chol_stacked, v


# ---------------- pure-JAX reference (layer-by-layer, mirrors PyTorch) --------
def _ref_trunk(x, grp):
    w, b = grp['input']; x = jax.nn.relu(x @ w + b)
    w, b = grp['first']; x = jax.nn.relu(x @ w + b)
    for w, b in grp['hidden']:
        x = jax.nn.relu(x @ w + b)
    return x


def _ref_heads(x, heads):
    w1, b1, w2, b2 = heads
    cols = []
    for j in range(w1.shape[0]):
        hj = jax.nn.relu(x @ w1[j] + b1[j])
        cols.append(hj @ w2[j] + b2[j])
    return jnp.concatenate(cols, axis=1)


def reference_forward(S, params):
    batch = S.shape[0]
    dat = jnp.concatenate([jnp.ones((batch, 1), jnp.float32)]
                          + [S[:, jnp.asarray(idx)] for idx in X_POS], axis=1)
    n_hemi = len(S_POS)
    betas_hemis, chol_hemis = [], []
    for h in range(n_hemi):
        s_hemi = S[:, jnp.asarray(S_POS[h])] / math.sqrt(len(S_POS[h]))
        if n_hemi > 1 and h == n_hemi - 1:
            s_hemi = s_hemi * math.sqrt(TIME_HEMI_PRIOR_VARIANCE)
        xb = _ref_trunk(s_hemi, params[h]['betas'])
        bet = _ref_heads(xb, params[h]['betas']['heads'])
        betas_hemis.append(bet.reshape(batch, N_OUTPUTS, N_DAT_COLS))
        s_a = s_hemi * math.sqrt(VOL_HEMI_PRIOR_VARIANCE)
        xa = _ref_trunk(s_a, params[h]['alphas'])
        al = _ref_heads(xa, params[h]['alphas']['heads'])
        rows, cols = jnp.tril_indices(N_OUTPUTS)
        vals = jnp.where(rows[None, :] == cols[None, :], jnp.abs(al), al)
        c = jnp.zeros((batch, N_OUTPUTS, N_OUTPUTS), jnp.float32)
        chol_hemis.append(c.at[:, rows, cols].set(vals))
    betas_red = sum(betas_hemis[1:], betas_hemis[0])
    chol_red = sum(chol_hemis[1:], chol_hemis[0])
    y_hat = jnp.einsum('bd,bod->bo', dat, betas_red)
    precision = jnp.einsum('brk,bck->brc', chol_red, chol_red)
    betas_stacked = jnp.transpose(jnp.stack(betas_hemis, axis=-1), (0, 2, 1, 3))
    chol_stacked = jnp.stack(chol_hemis, axis=-1)
    return y_hat, precision, betas_stacked, chol_stacked


# ---------------- driver -------------------------------------------------------
if __name__ == "__main__":
    key = jax.random.PRNGKey(0)
    k_inp, k_par = jax.random.split(key)
    S = jax.random.normal(k_inp, (BATCH, N_FEATURES), jnp.float32)
    params = init_params(k_par)
    packed = pack_params(params)

    fwd = jax.jit(lambda s: varnn_forward(s, packed))
    y_hat, precision, betas_stacked, chol_stacked, v = fwd(S)
    jax.block_until_ready((y_hat, precision, betas_stacked, chol_stacked))

    assert y_hat.shape == (BATCH, N_OUTPUTS)
    assert precision.shape == (BATCH, N_OUTPUTS, N_OUTPUTS)
    assert betas_stacked.shape == (BATCH, N_DAT_COLS, N_OUTPUTS, len(S_POS))
    assert chol_stacked.shape == (BATCH, N_OUTPUTS, N_OUTPUTS, len(S_POS))
    assert v == []

    # numeric check vs. the unfused pure-JAX mirror of the PyTorch module
    y_r, p_r, b_r, c_r = reference_forward(S, params)
    for got, ref in ((y_hat, y_r), (precision, p_r),
                     (betas_stacked, b_r), (chol_stacked, c_r)):
        assert bool(jnp.allclose(got, ref, rtol=1e-2, atol=1e-2))

    print("KERNEL_OK")
</pallas_src>

<mosaic_0001>
module attributes {stable_mosaic.version = 11 : i64} {
  func.func @_fused_kernel(%arg0: memref<8x16xf32, #tpu.memory_space<vmem>>, %arg1: memref<16x144xf32, #tpu.memory_space<vmem>>, %arg2: memref<128x128xf32, #tpu.memory_space<vmem>>, %arg3: memref<128x64xf32, #tpu.memory_space<vmem>>, %arg4: memref<64x256xf32, #tpu.memory_space<vmem>>, %arg5: memref<256x32xf32, #tpu.memory_space<vmem>>, %arg6: memref<32x256xf32, #tpu.memory_space<vmem>>, %arg7: memref<56x144xf32, #tpu.memory_space<vmem>>, %arg8: memref<8x128xf32, #tpu.memory_space<vmem>>) attributes {dimension_semantics = [], scalar_prefetch = 0 : i64, scratch_operands = 0 : i64, tpu.core_type = #tpu.core_type<tc>} {
    %c0 = arith.constant 0 : index
    %c0_0 = arith.constant 0 : index
    %0 = vector.load %arg0[%c0, %c0_0] : memref<8x16xf32, #tpu.memory_space<vmem>>, vector<8x16xf32>
    %c0_1 = arith.constant 0 : index
    %c0_2 = arith.constant 0 : index
    %1 = vector.load %arg1[%c0_1, %c0_2] : memref<16x144xf32, #tpu.memory_space<vmem>>, vector<16x144xf32>
    %cst = arith.constant dense<0.000000e+00> : vector<8x144xf32>
    %2 = tpu.matmul %0, %1, %cst {dimension_numbers = #tpu.dot_dimension_numbers<[1], [0], [0], [1], [0, 0, 1, 1], [], []>} : vector<8x16xf32>, vector<16x144xf32>, vector<8x144xf32> -> vector<8x144xf32>
    %3 = vector.extract_strided_slice %2 {offsets = [0, 0], sizes = [8, 128], strides = [1, 1]} : vector<8x144xf32> to vector<8x128xf32>
    %cst_3 = arith.constant 0.000000e+00 : f32
    %4 = vector.broadcast %cst_3 : f32 to vector<8x128xf32>
    %5 = arith.maximumf %3, %4 : vector<8x128xf32>
    %6 = vector.extract_strided_slice %2 {offsets = [0, 128], sizes = [8, 10], strides = [1, 1]} : vector<8x144xf32> to vector<8x10xf32>
    %c0_4 = arith.constant 0 : index
    %c0_5 = arith.constant 0 : index
    %7 = vector.load %arg2[%c0_4, %c0_5] : memref<128x128xf32, #tpu.memory_space<vmem>>, vector<128x128xf32>
    %cst_6 = arith.constant dense<0.000000e+00> : vector<8x128xf32>
    %8 = tpu.matmul %5, %7, %cst_6 {dimension_numbers = #tpu.dot_dimension_numbers<[1], [0], [0], [1], [0, 0, 1, 1], [], []>} : vector<8x128xf32>, vector<128x128xf32>, vector<8x128xf32> -> vector<8x128xf32>
    %c0_7 = arith.constant 0 : index
    %c0_8 = arith.constant 0 : index
    %9 = vector.load %arg6[%c0_7, %c0_8] : memref<32x256xf32, #tpu.memory_space<vmem>>, vector<1x128xf32>
    %10 = vector.broadcast %9 : vector<1x128xf32> to vector<8x128xf32>
    %11 = arith.addf %8, %10 : vector<8x128xf32>
    %cst_9 = arith.constant 0.000000e+00 : f32
    %12 = vector.broadcast %cst_9 : f32 to vector<8x128xf32>
    %13 = arith.maximumf %11, %12 : vector<8x128xf32>
    %c0_10 = arith.constant 0 : index
    %c0_11 = arith.constant 0 : index
    %14 = vector.load %arg3[%c0_10, %c0_11] : memref<128x64xf32, #tpu.memory_space<vmem>>, vector<128x64xf32>
    %cst_12 = arith.constant dense<0.000000e+00> : vector<8x64xf32>
    %15 = tpu.matmul %13, %14, %cst_12 {dimension_numbers = #tpu.dot_dimension_numbers<[1], [0], [0], [1], [0, 0, 1, 1], [], []>} : vector<8x128xf32>, vector<128x64xf32>, vector<8x64xf32> -> vector<8x64xf32>
    %c8 = arith.constant 8 : index
    %c0_13 = arith.constant 0 : index
    %16 = vector.load %arg6[%c8, %c0_13] : memref<32x256xf32, #tpu.memory_space<vmem>>, vector<1x64xf32>
    %17 = vector.broadcast %16 : vector<1x64xf32> to vector<8x64xf32>
    %18 = arith.addf %15, %17 : vector<8x64xf32>
    %cst_14 = arith.constant 0.000000e+00 : f32
    %19 = vector.broadcast %cst_14 : f32 to vector<8x64xf32>
    %20 = arith.maximumf %18, %19 : vector<8x64xf32>
    %c0_15 = arith.constant 0 : index
    %c0_16 = arith.constant 0 : index
    %21 = vector.load %arg4[%c0_15, %c0_16] : memref<64x256xf32, #tpu.memory_space<vmem>>, vector<64x256xf32>
    %cst_17 = arith.constant dense<0.000000e+00> : vector<8x256xf32>
    %22 = tpu.matmul %20, %21, %cst_17 {dimension_numbers = #tpu.dot_dimension_numbers<[1], [0], [0], [1], [0, 0, 1, 1], [], []>} : vector<8x64xf32>, vector<64x256xf32>, vector<8x256xf32> -> vector<8x256xf32>
    %c16 = arith.constant 16 : index
    %c0_18 = arith.constant 0 : index
    %23 = vector.load %arg6[%c16, %c0_18] : memref<32x256xf32, #tpu.memory_space<vmem>>, vector<1x256xf32>
    %24 = vector.broadcast %23 : vector<1x256xf32> to vector<8x256xf32>
    %25 = arith.addf %22, %24 : vector<8x256xf32>
    %cst_19 = arith.constant 0.000000e+00 : f32
    %26 = vector.broadcast %cst_19 : f32 to vector<8x256xf32>
    %27 = arith.maximumf %25, %26 : vector<8x256xf32>
    %c0_20 = arith.constant 0 : index
    %c0_21 = arith.constant 0 : index
    %28 = vector.load %arg5[%c0_20, %c0_21] : memref<256x32xf32, #tpu.memory_space<vmem>>, vector<256x32xf32>
    %cst_22 = arith.constant dense<0.000000e+00> : vector<8x32xf32>
    %29 = tpu.matmul %27, %28, %cst_22 {dimension_numbers = #tpu.dot_dimension_numbers<[1], [0], [0], [1], [0, 0, 1, 1], [], []>} : vector<8x256xf32>, vector<256x32xf32>, vector<8x32xf32> -> vector<8x32xf32>
    %c24 = arith.constant 24 : index
    %c0_23 = arith.constant 0 : index
    %30 = vector.load %arg6[%c24, %c0_23] : memref<32x256xf32, #tpu.memory_space<vmem>>, vector<1x32xf32>
    %31 = vector.broadcast %30 : vector<1x32xf32> to vector<8x32xf32>
    %32 = arith.addf %29, %31 : vector<8x32xf32>
    %33 = tpu.iota {dimensions = array<i32: 1>} : vector<8x32xi32>
    %c0_i32 = arith.constant 0 : i32
    %34 = vector.broadcast %c0_i32 : i32 to vector<8x32xi32>
    %35 = arith.cmpi slt, %33, %34 : vector<8x32xi32>
    %c20_i32 = arith.constant 20 : i32
    %36 = vector.broadcast %c20_i32 : i32 to vector<8x32xi32>
    %37 = arith.cmpi eq, %33, %36 : vector<8x32xi32>
    %38 = arith.ori %35, %37 : vector<8x32xi1>
    %c23_i32 = arith.constant 23 : i32
    %39 = vector.broadcast %c23_i32 : i32 to vector<8x32xi32>
    %40 = arith.cmpi eq, %33, %39 : vector<8x32xi32>
    %41 = arith.ori %38, %40 : vector<8x32xi1>
    %c24_i32 = arith.constant 24 : i32
    %42 = vector.broadcast %c24_i32 : i32 to vector<8x32xi32>
    %43 = arith.cmpi eq, %33, %42 : vector<8x32xi32>
    %44 = arith.ori %41, %43 : vector<8x32xi1>
    %c27_i32 = arith.constant 27 : i32
    %45 = vector.broadcast %c27_i32 : i32 to vector<8x32xi32>
    %46 = arith.cmpi eq, %33, %45 : vector<8x32xi32>
    %47 = arith.ori %44, %46 : vector<8x32xi1>
    %48 = math.absf %32 : vector<8x32xf32>
    %49 = arith.select %47, %48, %32 : vector<8x32xi1>, vector<8x32xf32>
    %50 = vector.extract_strided_slice %49 {offsets = [0, 0], sizes = [8, 10], strides = [1, 1]} : vector<8x32xf32> to vector<8x10xf32>
    %51 = vector.extract_strided_slice %49 {offsets = [0, 10], sizes = [8, 10], strides = [1, 1]} : vector<8x32xf32> to vector<8x10xf32>
    %52 = arith.addf %50, %51 : vector<8x10xf32>
    %c0_24 = arith.constant 0 : index
    %c0_25 = arith.constant 0 : index
    %53 = vector.load %arg7[%c0_24, %c0_25] : memref<56x144xf32, #tpu.memory_space<vmem>>, vector<32x144xf32>
    %cst_26 = arith.constant dense<0.000000e+00> : vector<8x144xf32>
    %54 = tpu.matmul %49, %53, %cst_26 {dimension_numbers = #tpu.dot_dimension_numbers<[1], [0], [0], [1], [0, 0, 1, 1], [], []>} : vector<8x32xf32>, vector<32x144xf32>, vector<8x144xf32> -> vector<8x144xf32>
    %55 = vector.extract_strided_slice %54 {offsets = [0, 0], sizes = [8, 128], strides = [1, 1]} : vector<8x144xf32> to vector<8x128xf32>
    %56 = vector.extract_strided_slice %54 {offsets = [0, 128], sizes = [8, 16], strides = [1, 1]} : vector<8x144xf32> to vector<8x16xf32>
    %57 = vector.extract_strided_slice %56 {offsets = [0, 0], sizes = [8, 8], strides = [1, 1]} : vector<8x16xf32> to vector<8x8xf32>
    %58 = vector.extract_strided_slice %56 {offsets = [0, 8], sizes = [8, 8], strides = [1, 1]} : vector<8x16xf32> to vector<8x8xf32>
    %59 = arith.mulf %57, %58 : vector<8x8xf32>
    %60 = arith.mulf %6, %52 : vector<8x10xf32>
    %c32 = arith.constant 32 : index
    %c0_27 = arith.constant 0 : index
    %61 = vector.load %arg7[%c32, %c0_27] : memref<56x144xf32, #tpu.memory_space<vmem>>, vector<10x128xf32>
    %cst_28 = arith.constant dense<0.000000e+00> : vector<8x128xf32>
    %62 = tpu.matmul %60, %61, %cst_28 {dimension_numbers = #tpu.dot_dimension_numbers<[1], [0], [0], [1], [0, 0, 1, 1], [], []>} : vector<8x10xf32>, vector<10x128xf32>, vector<8x128xf32> -> vector<8x128xf32>
    %63 = arith.addf %55, %62 : vector<8x128xf32>
    %c48 = arith.constant 48 : index
    %c0_29 = arith.constant 0 : index
    %64 = vector.load %arg7[%c48, %c0_29] : memref<56x144xf32, #tpu.memory_space<vmem>>, vector<8x128xf32>
    %cst_30 = arith.constant dense<0.000000e+00> : vector<8x128xf32>
    %65 = tpu.matmul %59, %64, %cst_30 {dimension_numbers = #tpu.dot_dimension_numbers<[1], [0], [0], [1], [0, 0, 1, 1], [], []>} : vector<8x8xf32>, vector<8x128xf32>, vector<8x128xf32> -> vector<8x128xf32>
    %66 = arith.addf %63, %65 : vector<8x128xf32>
    %c0_31 = arith.constant 0 : index
    %c0_32 = arith.constant 0 : index
    %67 = vector.load %arg8[%c0_31, %c0_32] : memref<8x128xf32, #tpu.memory_space<vmem>>, vector<8x128xf32>
    tpu.vector_store %arg8[%c0_31, %c0_32], %66 {strides = array<i32>} : memref<8x128xf32, #tpu.memory_space<vmem>>, vector<8x128xf32>,
    return
  }
}

</mosaic_0001>

<bundles_post_ra>
// kernel: _lambda_.1
= control target key start
LH: loop header
LB: loop body
LE: loop exit
PB: predicated region body
PF: predicated region fallthrough
CT: control target
= control target key end

     0   :  { %13 = vsyncpa [#allocation3], 0  ;;  %s1501_s0 = inlined_call_operand.vmem [shape: f32[8,16], index: 0, kind: input, shape index: {}]   ;;  %s1502_s1 = inlined_call_operand.vmem [shape: f32[16,144], index: 1, kind: input, shape index: {}]   ;;  %s1503_s2 = inlined_call_operand.hbm [shape: f32[128,128], index: 2, kind: input, shape index: {}]   ;;  %s1504_s3 = inlined_call_operand.hbm [shape: f32[128,64], index: 3, kind: input, shape index: {}]   ;;  %s1505_s4 = inlined_call_operand.hbm [shape: f32[64,256], index: 4, kind: input, shape index: {}]   ;;  %s1506_s5 = inlined_call_operand.hbm [shape: f32[256,32], index: 5, kind: input, shape index: {}]   ;;  %s1507_s6 = inlined_call_operand.hbm [shape: f32[32,256], index: 6, kind: input, shape index: {}]   ;;  %s1508_s7 = inlined_call_operand.hbm [shape: f32[56,144], index: 7, kind: input, shape index: {}]   ;;  %s1509_s8 = inlined_call_operand.vmem [shape: f32[8,128], index: 8, kind: output, shape index: {}]  }
   0x1   :  { %14 = vsyncpa [#allocation5], 0 }
   0x2   :  { %15 = vsyncpa [#allocation8], 0 }
   0x3   :  { %16 = vsyncpa [#allocation11], 0  ;;  %s1279_s27 = smov [#allocation4]   ;;  %s1280_s29 = smov [#allocation7]  }
   0x4   :  { %s38_s28 = sshll.u32 %s1279_s27, 4  ;;  %s62_s30 = sshll.u32 %s1280_s29, 4  ;;  %s39_s28 = int_to_ptr.vmem [resolvable:$true] %s38_s28  ;;  %s1340_s30 = int_to_ptr.vmem [resolvable:$true] %s62_s30 }
   0x5   :  { %s1139_s11 = scalar_lea.hbm %s1504_s3, 2048 }
   0x6   :  { %p1140_p0 = scmp.ne.s32.totalorder %s1504_s3, %s1139_s11  ;;  %p1143_p1 = scmp.lt.u32.totalorder %s1139_s11, %s1504_s3 }
   0x8   :  { %p1145_p2 = pnand %p1143_p1, %p1140_p0 }
   0xa   :  { %1148 = shalt.err (!%p1145_p2)
}
   0xb   :  { %s1149_s16 = scalar_lea.vmem %s39_s28, 2048  ;;  %p1154_p4 = scmp.lt.s32.totalorder %s39_s28, %s39_s28 }
   0xc   :  { %p1150_p3 = scmp.ne.s32.totalorder %s39_s28, %s1149_s16  ;;  %p1155_p5 = scmp.lt.s32.totalorder %s1149_s16, %s1149_s16 }
   0xe   :  { %p1156_p6 = por %p1155_p5, %p1154_p4 }
  0x10   :  { %p1157_p7 = pnand %p1156_p6, %p1150_p3 }
  0x12   :  { %1160 = shalt.err (!%p1157_p7)
}
  0x13   :  { %s1281_s17 = smov 128   ;;  %s1282_s18 = smov 8  }
  0x14   :  { %44 = dma.hbm_to_vmem [thread:$0]  %s1504_s3, 2048, %s39_s28, [#allocation5], %s1281_s17, %s1281_s17, %s1282_s18  }
  0x15   :  { %s1161_s23 = scalar_lea.hbm %s1506_s5, 4096 }
  0x16   :  { %p1162_p8 = scmp.ne.s32.totalorder %s1506_s5, %s1161_s23  ;;  %p1165_p9 = scmp.lt.u32.totalorder %s1161_s23, %s1506_s5 }
  0x18   :  { %p1167_p10 = pnand %p1165_p9, %p1162_p8 }
  0x1a   :  { %1170 = shalt.err (!%p1167_p10)
}
  0x1b   :  { %s1171_s29 = scalar_lea.vmem %s1340_s30, 4096  ;;  %p1176_p12 = scmp.lt.s32.totalorder %s1340_s30, %s1340_s30 }
  0x1c   :  { %p1172_p11 = scmp.ne.s32.totalorder %s1340_s30, %s1171_s29  ;;  %p1177_p13 = scmp.lt.s32.totalorder %s1171_s29, %s1171_s29 }
  0x1e   :  { %p1178_p0 = por %p1177_p13, %p1176_p12 }
  0x20   :  { %p1179_p1 = pnand %p1178_p0, %p1172_p11 }
  0x22   :  { %1182 = shalt.err (!%p1179_p1)
}
  0x23   :  { %68 = dma.hbm_to_vmem [thread:$0]  %s1506_s5, 4096, %s1340_s30, [#allocation8], %s1281_s17, %s1281_s17, %s1282_s18  }
  0x24   :  { %s1283_s9 = smov [#allocation2]   ;;  %s1284_s11 = smov [#allocation6]  }
  0x25   :  { %s26_s10 = sshll.u32 %s1283_s9, 4  ;;  %s50_s12 = sshll.u32 %s1284_s11, 4  ;;  %s27_s10 = int_to_ptr.vmem [resolvable:$true] %s26_s10  ;;  %s1377_s12 = int_to_ptr.vmem [resolvable:$true] %s50_s12 }
  0x26   :  { %s1183_s15 = scalar_lea.hbm %s1503_s2, 2048 }
  0x27   :  { %p1184_p2 = scmp.ne.s32.totalorder %s1503_s2, %s1183_s15  ;;  %p1187_p3 = scmp.lt.u32.totalorder %s1183_s15, %s1503_s2 }
  0x29   :  { %p1189_p4 = pnand %p1187_p3, %p1184_p2 }
  0x2b   :  { %1192 = shalt.err (!%p1189_p4)
}
  0x2c   :  { %s1193_s5 = scalar_lea.vmem %s27_s10, 2048  ;;  %p1198_p6 = scmp.lt.s32.totalorder %s27_s10, %s27_s10 }
  0x2d   :  { %p1194_p5 = scmp.ne.s32.totalorder %s27_s10, %s1193_s5  ;;  %p1199_p7 = scmp.lt.s32.totalorder %s1193_s5, %s1193_s5 }
  0x2f   :  { %p1200_p8 = por %p1199_p7, %p1198_p6 }
  0x31   :  { %p1201_p9 = pnand %p1200_p8, %p1194_p5 }
  0x33   :  { %1204 = shalt.err (!%p1201_p9)
}
  0x34   :  { %32 = dma.hbm_to_vmem [thread:$0]  %s1503_s2, 2048, %s27_s10, [#allocation3], %s1281_s17, %s1281_s17, %s1282_s18  }
  0x35   :  { %s1205_s25 = scalar_lea.hbm %s1505_s4, 2048 }
  0x36   :  { %p1206_p10 = scmp.ne.s32.totalorder %s1505_s4, %s1205_s25  ;;  %p1209_p11 = scmp.lt.u32.totalorder %s1205_s25, %s1505_s4 }
  0x38   :  { %p1211_p12 = pnand %p1209_p11, %p1206_p10 }
  0x3a   :  { %1214 = shalt.err (!%p1211_p12)
}
  0x3b   :  { %s1215_s28 = scalar_lea.vmem %s1377_s12, 2048  ;;  %p1220_p0 = scmp.lt.s32.totalorder %s1377_s12, %s1377_s12 }
  0x3c   :  { %p1216_p13 = scmp.ne.s32.totalorder %s1377_s12, %s1215_s28  ;;  %p1221_p1 = scmp.lt.s32.totalorder %s1215_s28, %s1215_s28 }
  0x3e   :  { %p1222_p2 = por %p1221_p1, %p1220_p0 }
  0x40   :  { %p1223_p3 = pnand %p1222_p2, %p1216_p13 }
  0x42   :  { %1226 = shalt.err (!%p1223_p3)
}
  0x43   :  { %s1285_s2 = smov 256   ;;  %s1286_s17 = smov 16  }
  0x44   :  { %56 = dma.hbm_to_vmem [thread:$0]  %s1505_s4, 2048, %s1377_s12, [#allocation5], %s1285_s2, %s1285_s2, %s1286_s17  }
  0x45   :  { %s1287_s10 = smov [#allocation9]   ;;  %s1288_s13 = smov [#allocation10]  }
  0x46   :  { %s74_s11 = sshll.u32 %s1287_s10, 4  ;;  %s86_s14 = sshll.u32 %s1288_s13, 4  ;;  %s75_s11 = int_to_ptr.vmem [resolvable:$true] %s74_s11  ;;  %s1414_s14 = int_to_ptr.vmem [resolvable:$true] %s86_s14 }
  0x47   :  { %s1227_s19 = scalar_lea.hbm %s1507_s6, 1024 }
  0x48   :  { %p1228_p4 = scmp.ne.s32.totalorder %s1507_s6, %s1227_s19  ;;  %p1231_p5 = scmp.lt.u32.totalorder %s1227_s19, %s1507_s6 }
  0x4a   :  { %p1233_p6 = pnand %p1231_p5, %p1228_p4 }
  0x4c   :  { %1236 = shalt.err (!%p1233_p6)
}
  0x4d   :  { %s1237_s4 = scalar_lea.vmem %s75_s11, 1024  ;;  %p1242_p8 = scmp.lt.s32.totalorder %s75_s11, %s75_s11 }
  0x4e   :  { %p1238_p7 = scmp.ne.s32.totalorder %s75_s11, %s1237_s4  ;;  %p1243_p9 = scmp.lt.s32.totalorder %s1237_s4, %s1237_s4 }
  0x50   :  { %p1244_p10 = por %p1243_p9, %p1242_p8 }
  0x52   :  { %p1245_p11 = pnand %p1244_p10, %p1238_p7 }
  0x54   :  { %1248 = shalt.err (!%p1245_p11)
}
  0x55   :  { %80 = dma.hbm_to_vmem [thread:$0]  %s1507_s6, 1024, %s75_s11, [#allocation8], %s1285_s2, %s1285_s2, %s1286_s17  }
  0x56   :  { %s1249_s25 = scalar_lea.hbm %s1508_s7, 1792 }
  0x57   :  { %p1250_p12 = scmp.ne.s32.totalorder %s1508_s7, %s1249_s25  ;;  %p1253_p13 = scmp.lt.u32.totalorder %s1249_s25, %s1508_s7 }
  0x59   :  { %p1255_p0 = pnand %p1253_p13, %p1250_p12 }
  0x5b   :  { %1258 = shalt.err (!%p1255_p0)
}
  0x5c   :  { %s1259_s28 = scalar_lea.vmem %s1414_s14, 1792  ;;  %p1264_p2 = scmp.lt.s32.totalorder %s1414_s14, %s1414_s14 }
  0x5d   :  { %p1260_p1 = scmp.ne.s32.totalorder %s1414_s14, %s1259_s28  ;;  %p1265_p3 = scmp.lt.s32.totalorder %s1259_s28, %s1259_s28 }
  0x5f   :  { %p1266_p4 = por %p1265_p3, %p1264_p2 }
  0x61   :  { %p1267_p5 = pnand %p1266_p4, %p1260_p1 }
  0x63   :  { %1270 = shalt.err (!%p1267_p5)
}
  0x64   :  { %92 = dma.hbm_to_vmem [thread:$0]  %s1508_s7, 1792, %s1414_s14, [#allocation11], %s1285_s2, %s1285_s2, %s1286_s17  }
  0x65   :  { %1271 = dma.done.wait [#allocation3], 2048  }
  0x66   :  { %1272 = vsyncadd [#allocation3], 4294965248 }
  0x67   :  { %1273 = dma.done.wait [#allocation5], 4096  }
  0x68   :  { %1274 = vsyncadd [#allocation5], 4294963200 }
  0x69   :  { %1275 = dma.done.wait [#allocation8], 5120  }
  0x6a   :  { %1276 = vsyncadd [#allocation8], 4294962176 }
  0x6b   :  { %1277 = dma.done.wait [#allocation11], 1792  }
  0x6c   :  { %1278 = vsyncadd [#allocation11], 4294965504  ;;  %v1289_v0 = vmov 0.0   ;;  %v1290_v1 = vmov 0.0|0.0   ;;  %v113_v2 = vld [vmem:[%s1502_s1 + $0x8] sm:$0xff]  ;;  %v115_v3 = vld [vmem:[%s1502_s1 + $0x18] sm:$0xff] }
  0x6d   :  { %184 = vmatprep.mubr.f32.mxu0 %v1289_v0  ;;  %1015 = vmatprep.subr.bf16.mxu1 %v1290_v1  ;;  %v112_v4 = vld [vmem:[%s1502_s1] sm:$0xff]  ;;  %v1011_v5 = vpack.c.bf16 %v115_v3, %v113_v2  ;;  %v114_v6 = vld [vmem:[%s1502_s1 + $0x10] sm:$0xff]  ;;  %v193_v9 = vld [vmem:[#allocation2 + $0x8] sm:$0xff]  ;;  %vm116_vm0 = vcmask 130048   ;;  %vm1291_vm1 = vmmov 0   ;;  %vm397_vm2 = vcmask 523264  }
  0x6e   :  { %v192_v7 = vld [vmem:[#allocation2] sm:$0xff]  ;;  %v1013_v8 = vpack.c.bf16 %v114_v6, %v112_v4  ;;  %v194_v10 = vld [vmem:[#allocation2 + $0x10] sm:$0xff]  ;;  %v195_v11 = vld [vmem:[#allocation2 + $0x18] sm:$0xff]  ;;  %961 = vmatprep.mubr.msk.f32.mxu1 %vm1291_vm1, %v1289_v0  ;;  %vm689_vm9 = vcmask 1041408   ;;  %vm603_vm11 = vcmask 261120   ;;  %vm1292_vm12 = vmmov 1  }
  0x6f   :  { %1012 = vmatprep.subr.bf16.mxu0 %v1011_v5  ;;  %v1016_v12 = vpack.c.bf16 %v193_v9, %v192_v7  ;;  %v111_v13 = vld [vmem:[%s1501_s0] sm:$0xff]  ;;  %v1019_v14 = vpack.c.bf16 %v195_v11, %v194_v10  ;;  %v197_v16 = vld [vmem:[#allocation2 + $0x28] sm:$0xff]  ;;  %v198_v18 = vld [vmem:[#allocation2 + $0x30] sm:$0xff]  ;;  %s1293_s0 = smov 118   ;;  %vm685_vm14 = vcmask 80896   ;;  %s1294_s1 = smov 120  }
  0x70   :  { %1014 = vmatpush1.bf16.msra.mxu0 %v1013_v8  ;;  %v196_v15 = vld [vmem:[#allocation2 + $0x20] sm:$0xff]  ;;  %v199_v19 = vld [vmem:[#allocation2 + $0x38] sm:$0xff]  ;;  %v201_v22 = vld [vmem:[#allocation2 + $0x48] sm:$0xff]  ;;  %vm765_vm15 = vcmask 64512  }
  0x71   :  { %1017 = vmatpush3.bf16.msra.mxu1 %v1016_v12  ;;  %1039 = vmatprep.subr.bf16.mxu0 %v1290_v1  ;;  %v1022_v17 = vpack.c.bf16 %v197_v16, %v196_v15  ;;  %v1025_v20 = vpack.c.bf16 %v199_v19, %v198_v18  ;;  %v200_v21 = vld [vmem:[#allocation2 + $0x40] sm:$0xff]  ;;  %v202_v24 = vld [vmem:[#allocation2 + $0x50] sm:$0xff]  ;;  %v203_v25 = vld [vmem:[#allocation2 + $0x58] sm:$0xff] }
  0x72   :  { %1018 = vmatprep.subr.bf16.mxu1 %v1290_v1  ;;  %v1028_v23 = vpack.c.bf16 %v201_v22, %v200_v21  ;;  %v1031_v26 = vpack.c.bf16 %v203_v25, %v202_v24  ;;  %v204_v27 = vld [vmem:[#allocation2 + $0x60] sm:$0xff]  ;;  %v205_v28 = vld [vmem:[#allocation2 + $0x68] sm:$0xff]  ;;  %v206_v30 = vld [vmem:[#allocation2 + $0x70] sm:$0xff] }
  0x73   :  { %849 = vmatmul.mubr.msk.f32.vlgmr.msra.gmra.mrb[0].mxu0 %vm116_vm0, %v111_v13  ;;  %v1034_v29 = vpack.c.bf16 %v205_v28, %v204_v27  ;;  %v207_v31 = vld [vmem:[#allocation2 + $0x78] sm:$0xff]  ;;  %v280_v33 = vld [vmem:[#allocation4] sm:$0xff]  ;;  %v281_v34 = vld [vmem:[#allocation4 + $0x8] sm:$0xff] }
  0x74   :  { %v1037_v32 = vpack.c.bf16 %v207_v31, %v206_v30  ;;  %996 = vmatprep.mubr.msk.f32.mxu0 %vm1291_vm1, %v1289_v0  ;;  %v282_v35 = vld [vmem:[#allocation4 + $0x10] sm:$0xff]  ;;  %v1040_v36 = vpack.c.bf16 %v281_v34, %v280_v33  ;;  %v283_v37 = vld [vmem:[#allocation4 + $0x18] sm:$0xff]  ;;  %v284_v39 = vld [vmem:[#allocation4 + $0x20] sm:$0xff] }
  0x75   :  { %1020 = vmatpush3.bf16.msra.mxu1 %v1019_v14  ;;  %v1043_v38 = vpack.c.bf16 %v283_v37, %v282_v35  ;;  %v285_v40 = vld [vmem:[#allocation4 + $0x28] sm:$0xff]  ;;  %v286_v42 = vld [vmem:[#allocation4 + $0x30] sm:$0xff]  ;;  %v287_v43 = vld [vmem:[#allocation4 + $0x38] sm:$0xff] }
  0x76   :  { %1021 = vmatprep.subr.bf16.mxu1 %v1290_v1  ;;  %1041 = vmatpush3.bf16.msra.mxu0 %v1040_v36  ;;  %v1046_v41 = vpack.c.bf16 %v285_v40, %v284_v39  ;;  %v1049_v44 = vpack.c.bf16 %v287_v43, %v286_v42  ;;  %v288_v45 = vld [vmem:[#allocation4 + $0x40] sm:$0xff]  ;;  %v289_v46 = vld [vmem:[#allocation4 + $0x48] sm:$0xff]  ;;  %v290_v48 = vld [vmem:[#allocation4 + $0x50] sm:$0xff] }
  0x77   :  { %1042 = vmatprep.subr.bf16.mxu0 %v1290_v1  ;;  %v1052_v47 = vpack.c.bf16 %v289_v46, %v288_v45  ;;  %v291_v49 = vld [vmem:[#allocation4 + $0x58] sm:$0xff]  ;;  %v292_v51 = vld [vmem:[#allocation4 + $0x60] sm:$0xff]  ;;  %v293_v52 = vld [vmem:[#allocation4 + $0x68] sm:$0xff] }
  0x78   :  { %v1055_v50 = vpack.c.bf16 %v291_v49, %v290_v48  ;;  %v1058_v53 = vpack.c.bf16 %v293_v52, %v292_v51  ;;  %v294_v57 = vld [vmem:[#allocation4 + $0x70] sm:$0xff]  ;;  %v295_v58 = vld [vmem:[#allocation4 + $0x78] sm:$0xff]  ;;  %v369_v60 = vld [vmem:[#allocation6 + $0x8] sm:$0xff] }
  0x79   :  { %1023 = vmatpush3.bf16.msra.mxu1 %v1022_v17  ;;  %v1061_v59 = vpack.c.bf16 %v295_v58, %v294_v57  ;;  %v371_v61 = vld [vmem:[#allocation6 + $0x18] sm:$0xff]  ;;  %v368_v62 = vld [vmem:[#allocation6] sm:$0xff]  ;;  %v370_v2 = vld [vmem:[#allocation6 + $0x10] sm:$0xff] }
  0x7a   :  { %1024 = vmatprep.subr.bf16.mxu1 %v1290_v1  ;;  %1044 = vmatpush3.bf16.msra.mxu0 %v1043_v38  ;;  %v1063_v63 = vpack.c.bf16 %v371_v61, %v369_v60  ;;  %v373_v3 = vld [vmem:[#allocation6 + $0x28] sm:$0xff]  ;;  %v375_v4 = vld [vmem:[#allocation6 + $0x38] sm:$0xff]  ;;  %v1065_v5 = vpack.c.bf16 %v370_v2, %v368_v62  ;;  %v372_v7 = vld [vmem:[#allocation6 + $0x20] sm:$0xff] }
  0x7b   :  { %1045 = vmatprep.subr.bf16.mxu0 %v1290_v1  ;;  %v1067_v6 = vpack.c.bf16 %v375_v4, %v373_v3  ;;  %v374_v8 = vld [vmem:[#allocation6 + $0x30] sm:$0xff]  ;;  %v377_v9 = vld [vmem:[#allocation6 + $0x48] sm:$0xff]  ;;  %v379_v10 = vld [vmem:[#allocation6 + $0x58] sm:$0xff] }
  0x7c   :  { %v1069_v11 = vpack.c.bf16 %v374_v8, %v372_v7  ;;  %v1071_v12 = vpack.c.bf16 %v379_v10, %v377_v9  ;;  %v376_v13 = vld [vmem:[#allocation6 + $0x40] sm:$0xff]  ;;  %v378_v14 = vld [vmem:[#allocation6 + $0x50] sm:$0xff]  ;;  %v381_v21 = vld [vmem:[#allocation6 + $0x68] sm:$0xff] }
  0x7d   :  { %1026 = vmatpush3.bf16.msra.mxu1 %v1025_v20  ;;  %v1073_v15 = vpack.c.bf16 %v378_v14, %v376_v13  ;;  %v208_v16 = vld [vmem:[#allocation9] ss:$0 sm:$0xff]  ;;  %v383_v22 = vld [vmem:[#allocation6 + $0x78] sm:$0xff]  ;;  %v382_v25 = vld [vmem:[#allocation6 + $0x70] sm:$0xff] }
  0x7e   :  { %1027 = vmatprep.subr.bf16.mxu1 %v1290_v1  ;;  %1047 = vmatpush3.bf16.msra.mxu0 %v1046_v41  ;;  %v380_v24 = vld [vmem:[#allocation6 + $0x60] sm:$0xff]  ;;  %v491_v28 = vld [vmem:[#allocation7 + $0x88] sm:$0xff]  ;;  %v493_v33 = vld [vmem:[#allocation7 + $0x98] sm:$0xff] }
  0x7f   :  { %1048 = vmatprep.subr.bf16.mxu0 %v1290_v1  ;;  %v490_v27 = vld [vmem:[#allocation7 + $0x80] sm:$0xff]  ;;  %v475_v31 = vld [vmem:[#allocation7 + $0x8] sm:$0xff]  ;;  %v476_v36 = vld [vmem:[#allocation7 + $0x10] sm:$0xff] }
  0x80   :  { %v1079_v30 = vpack.c.bf16 %v491_v28, %v490_v27  ;;  %v477_v37 = vld [vmem:[#allocation7 + $0x18] sm:$0xff]  ;;  %v494_v38 = vld [vmem:[#allocation7 + $0xa0] sm:$0xff]  ;;  %v495_v39 = vld [vmem:[#allocation7 + $0xa8] sm:$0xff] }
  0x81   :  { %1029 = vmatpush3.bf16.msra.mxu1 %v1028_v23  ;;  %v1075_v23 = vpack.c.bf16 %v383_v22, %v381_v21  ;;  %v1085_v40 = vpack.c.bf16 %v477_v37, %v476_v36  ;;  %v1087_v41 = vpack.c.bf16 %v495_v39, %v494_v38  ;;  %v478_v42 = vld [vmem:[#allocation7 + $0x20] sm:$0xff]  ;;  %v479_v43 = vld [vmem:[#allocation7 + $0x28] sm:$0xff]  ;;  %v497_v45 = vld [vmem:[#allocation7 + $0xb8] sm:$0xff] }
  0x82   :  { %1030 = vmatprep.subr.bf16.mxu1 %v1290_v1  ;;  %1050 = vmatpush3.bf16.msra.mxu0 %v1049_v44  ;;  %v496_v44 = vld [vmem:[#allocation7 + $0xb0] sm:$0xff]  ;;  %v1089_v46 = vpack.c.bf16 %v479_v43, %v478_v42  ;;  %v481_v49 = vld [vmem:[#allocation7 + $0x38] sm:$0xff]  ;;  %v499_v51 = vld [vmem:[#allocation7 + $0xc8] sm:$0xff] }
  0x83   :  { %1051 = vmatprep.subr.bf16.mxu0 %v1290_v1  ;;  %v480_v48 = vld [vmem:[#allocation7 + $0x30] sm:$0xff]  ;;  %v501_v58 = vld [vmem:[#allocation7 + $0xd8] sm:$0xff]  ;;  %v503_v2 = vld [vmem:[#allocation7 + $0xe8] sm:$0xff] }
  0x84   :  { %v1093_v52 = vpack.c.bf16 %v481_v49, %v480_v48  ;;  %v500_v57 = vld [vmem:[#allocation7 + $0xd0] sm:$0xff]  ;;  %v485_v62 = vld [vmem:[#allocation7 + $0x58] sm:$0xff]  ;;  %v486_v10 = vld [vmem:[#allocation7 + $0x60] sm:$0xff] }
  0x85   :  { %1032 = vmatpush3.bf16.msra.mxu1 %v1031_v26  ;;  %v1077_v26 = vpack.c.bf16 %v382_v25, %v380_v24  ;;  %v1099_v60 = vpack.c.bf16 %v501_v58, %v500_v57  ;;  %v484_v61 = vld [vmem:[#allocation7 + $0x50] sm:$0xff]  ;;  %v505_v14 = vld [vmem:[#allocation7 + $0xf8] sm:$0xff]  ;;  %v385_v22 = vld [vmem:[#allocation9 + $0x20] ss:$8 sm:$0x3] }
  0x86   :  { %1033 = vmatprep.subr.bf16.mxu1 %v1290_v1  ;;  %1053 = vmatpush3.bf16.msra.mxu0 %v1052_v47  ;;  %v1091_v47 = vpack.c.bf16 %v497_v45, %v496_v44  ;;  %v1101_v3 = vpack.c.bf16 %v485_v62, %v484_v61  ;;  %v504_v13 = vld [vmem:[#allocation7 + $0xf0] sm:$0xff]  ;;  %v600_v38 = vld [vmem:[#allocation10 + $0x28] sm:$0xff]  ;;  %v602_v39 = vld [vmem:[#allocation10 + $0x38] sm:$0xff] }
  0x87   :  { %1054 = vmatprep.subr.bf16.mxu0 %v1290_v1  ;;  %v597_v36 = vld [vmem:[#allocation10 + $0x10] sm:$0xff]  ;;  %v683_v49 = vld [vmem:[#allocation10 + $0x40] sm:$0xff]  ;;  %vm1121_vm13 = vmpackc.low %vm689_vm9, %vm1292_vm12 }
  0x88   :  { %v601_v42 = vld [vmem:[#allocation10 + $0x30] sm:$0xff]  ;;  %v764_v58 = vld [vmem:[#allocation10 + $0x60] sm:$0xff] }
  0x89   :  { %1035 = vmatpush3.bf16.msra.mxu1 %v1034_v29  ;;  %v474_v29 = vld [vmem:[#allocation7] sm:$0xff] }
  0x8a   :  { %1036 = vmatprep.subr.bf16.mxu1 %v1290_v1  ;;  %1056 = vmatpush3.bf16.msra.mxu0 %v1055_v50  ;;  %v1081_v34 = vpack.c.bf16 %v475_v31, %v474_v29  ;;  %v498_v50 = vld [vmem:[#allocation7 + $0xc0] sm:$0xff] }
  0x8b   :  { %1057 = vmatprep.subr.bf16.mxu0 %v1290_v1 }
  0x8d   :  { %1038 = vmatpush3.bf16.msra.mxu1 %v1037_v32  ;;  %v492_v32 = vld [vmem:[#allocation7 + $0x90] sm:$0xff] }
  0x8e   :  { %1059 = vmatpush3.bf16.msra.mxu0 %v1058_v53  ;;  %1064 = vmatprep.subr.bf16.mxu1 %v1063_v63  ;;  %v1083_v35 = vpack.c.bf16 %v493_v33, %v492_v32  ;;  %v1095_v53 = vpack.c.bf16 %v499_v51, %v498_v50  ;;  %v502_v63 = vld [vmem:[#allocation7 + $0xe0] sm:$0xff]  ;;  %v596_v32 = vld [vmem:[#allocation10 + $0x8] sm:$0xff]  ;;  %v598_v33 = vld [vmem:[#allocation10 + $0x18] sm:$0xff] }
  0x8f   :  { %1060 = vmatprep.subr.bf16.mxu0 %v1290_v1  ;;  %v1103_v4 = vpack.c.bf16 %v503_v2, %v502_v63  ;;  %v684_v50 = vld [vmem:[#allocation10 + $0x50] sm:$0x3] }
  0x92   :  { %1062 = vmatpush3.bf16.msra.mxu0 %v1061_v59 }
  0x93   :  { %1080 = vmatprep.subr.bf16.mxu0 %v1079_v30 }
 0x146   :  { %v186_v54 = vpop.f32.mrb[0].mxu0 }
 0x147   :  { %v191_v55 = vmax.f32 %v186_v54, 0.0  ;;  %v1487_v56 = vpop.f32.mrb[1].mxu0  ;;  %v482_v54 = vld [vmem:[#allocation7 + $0x40] sm:$0xff] }
 0x149   :  { %962 = vmatmul.mubr.f32.vlgmr.msra.gmra.mrb[0].mxu1 %v191_v55  ;;  %v483_v55 = vld [vmem:[#allocation7 + $0x48] sm:$0xff] }
 0x14a   :  { %465 = vmatprep.mubr.f32.mxu1 %v1289_v0  ;;  %1066 = vmatpush1.bf16.msra.mxu1 %v1065_v5  ;;  %v1097_v59 = vpack.c.bf16 %v483_v55, %v482_v54  ;;  %v296_v5 = vld [vmem:[#allocation9 + $0x10] ss:$0 sm:$0xff] }
 0x14b   :  { %1068 = vmatprep.subr.bf16.mxu1 %v1067_v6 }
 0x14e   :  { %1070 = vmatpush1.bf16.msra.mxu1 %v1069_v11  ;;  %v487_v11 = vld [vmem:[#allocation7 + $0x68] sm:$0xff] }
 0x14f   :  { %1072 = vmatprep.subr.bf16.mxu1 %v1071_v12  ;;  %v1105_v12 = vpack.c.bf16 %v487_v11, %v486_v10 }
 0x152   :  { %1074 = vmatpush1.bf16.msra.mxu1 %v1073_v15  ;;  %v1107_v15 = vpack.c.bf16 %v505_v14, %v504_v13 }
 0x153   :  { %1076 = vmatprep.subr.bf16.mxu1 %v1075_v23 }
 0x156   :  { %1078 = vmatpush1.bf16.msra.mxu1 %v1077_v26 }
 0x21c   :  { %v275_v17 = vpop.f32.mrb[0].mxu1 }
 0x21d   :  { %v276_v18 = vadd.f32 %v275_v17, %v208_v16  ;;  %v963_v19 = vpop.f32.mrb[1].mxu1  ;;  %v488_v16 = vld [vmem:[#allocation7 + $0x70] sm:$0xff]  ;;  %v489_v17 = vld [vmem:[#allocation7 + $0x78] sm:$0xff] }
 0x21e   :  { %v387_v19 = vlaneseq }
 0x21f   :  { %v279_v20 = vmax.f32 %v276_v18, 0.0  ;;  %v1109_v18 = vpack.c.bf16 %v489_v17, %v488_v16 }
 0x220   :  { %v578_v44 = vand.u32 127, %v387_v19 }
 0x221   :  { %997 = vmatmul.mubr.f32.vlgmr.msra.gmra.mrb[2].mxu0 %v279_v20  ;;  %v388_v20 = vshrl.u32 %v387_v19, 7 }
 0x222   :  { %1082 = vmatpush3.bf16.msra.mxu0 %v1081_v34  ;;  %v1111_v34 = vpack.c.bf16 %v598_v33, %v596_v32  ;;  %vm580_vm3 = vcmp.eq.s32.totalorder %v578_v44, 20  ;;  %vm582_vm4 = vcmp.eq.s32.totalorder %v578_v44, 23  ;;  %vm584_vm6 = vcmp.eq.s32.totalorder %v578_v44, 24 }
 0x223   :  { %1084 = vmatprep.subr.bf16.mxu0 %v1083_v35  ;;  %v389_v21 = vsub.s32 0, %v388_v20  ;;  %v393_v23 = vsub.s32 1, %v388_v20  ;;  %v595_v35 = vld [vmem:[#allocation10] sm:$0xff]  ;;  %vm583_vm5 = vmor %vm580_vm3, %vm582_vm4  ;;  %vm586_vm8 = vcmp.eq.s32.totalorder %v578_v44, 27 }
 0x224   :  { %v1113_v37 = vpack.c.bf16 %v597_v36, %v595_v35  ;;  %1112 = vmatprep.subr.bf16.mxu1 %v1111_v34  ;;  %vm585_vm7 = vmor %vm583_vm5, %vm584_vm6 }
 0x225   :  { %v390_v24 = vrot.slane %v385_v22, %v389_v21  ;;  %v394_v25 = vrot.slane %v385_v22, %v393_v23  ;;  %vm587_vm10 = vmor %vm585_vm7, %vm586_vm8 }
 0x226   :  { %1086 = vmatpush3.bf16.msra.mxu0 %v1085_v40  ;;  %v1115_v40 = vpack.c.bf16 %v602_v39, %v600_v38 }
 0x227   :  { %1088 = vmatprep.subr.bf16.mxu0 %v1087_v41  ;;  %v599_v41 = vld [vmem:[#allocation10 + $0x20] sm:$0xff] }
 0x228   :  { %v1117_v43 = vpack.c.bf16 %v601_v42, %v599_v41 }
 0x22a   :  { %1090 = vmatpush3.bf16.msra.mxu0 %v1089_v46  ;;  %v506_v46 = vld [vmem:[#allocation9 + $0x30] ss:$0 sm:$0xff] }
 0x22b   :  { %1092 = vmatprep.subr.bf16.mxu0 %v1091_v47 }
 0x22e   :  { %1094 = vmatpush3.bf16.msra.mxu0 %v1093_v52 }
 0x22f   :  { %1096 = vmatprep.subr.bf16.mxu0 %v1095_v53  ;;  %v1120_v53 = vpack.c.bf16 %v684_v50, %v683_v49 }
 0x232   :  { %1098 = vmatpush3.bf16.msra.mxu0 %v1097_v59 }
 0x233   :  { %1100 = vmatprep.subr.bf16.mxu0 %v1099_v60 }
 0x236   :  { %1102 = vmatpush3.bf16.msra.mxu0 %v1101_v3 }
 0x237   :  { %1104 = vmatprep.subr.bf16.mxu0 %v1103_v4 }
 0x23a   :  { %1106 = vmatpush3.bf16.msra.mxu0 %v1105_v12 }
 0x23b   :  { %1108 = vmatprep.subr.bf16.mxu0 %v1107_v15 }
 0x23e   :  { %1110 = vmatpush3.bf16.msra.mxu0 %v1109_v18 }
 0x2f4   :  { %v363_v6 = vpop.f32.mrb[2].mxu0 }
 0x2f5   :  { %v364_v7 = vadd.f32 %v363_v6, %v296_v5  ;;  %v998_v8 = vpop.f32.mrb[3].mxu0 }
 0x2f7   :  { %v367_v9 = vmax.f32 %v364_v7, 0.0 }
 0x2f9   :  { %850 = vmatmul.mubr.msk.f32.vlgmr.msra.gmra.mrb[2].mxu1 %vm397_vm2, %v367_v9 }
 0x2fa   :  { %670 = vmatprep.mubr.f32.mxu1 %v1289_v0  ;;  %1114 = vmatpush1.bf16.msra.mxu1 %v1113_v37 }
 0x2fb   :  { %1116 = vmatprep.subr.bf16.mxu1 %v1115_v40 }
 0x2fe   :  { %1118 = vmatpush1.bf16.msra.mxu1 %v1117_v43 }
 0x2ff   :  { %1119 = vmatprep.subr.bf16.mxu1 %v1290_v1 }
 0x3cc   :  { %v467_v26 = vpop.f32.mrb[2].mxu1 }
 0x3cd   :  { %v468_v27 = vadd.f32 %v467_v26, %v390_v24  ;;  %v469_v28 = vpop.f32.mrb[3].mxu1 }
 0x3ce   :  { %v470_v29 = vadd.f32 %v469_v28, %v394_v25 }
 0x3cf   :  { %v472_v31 = vmax.f32 %v468_v27, 0.0 }
 0x3d0   :  { %v473_v30 = vmax.f32 %v470_v29, 0.0 }
 0x3d2   :  { %571 = vmatprep.mubr.f32.mxu0 %v473_v30 }
 0x3d3   :  { %572 = vmatmul.mubr.f32.vlgmr.msra.gmra.mrb[4].mxu0 %v472_v31 }
 0x4a6   :  { %v921_v45 = vpop.f32.mrb[4].mxu0 }
 0x4a7   :  { %v922_v47 = vpop.f32.mrb[5].mxu0 }
 0x4a8   :  { %v923_v48 = vadd.f32 %v922_v47, %v921_v45 }
 0x4aa   :  { %v574_v51 = vadd.f32 %v923_v48, %v506_v46 }
 0x4ac   :  { %v588_v52 = vand.u32 2147483647, %v574_v51 }
 0x4ae   :  { %v589_v1 = vsel %vm587_vm10, %v588_v52, %v574_v51 }
 0x4af   :  { %591 = vrot.lane.b32.xlu0 %v589_v1, %s1293_s0  ;;  %851 = vmatmul.mubr.msk.f32.vlgmr.msra.gmra.mrb[4].mxu1 %vm603_vm11, %v589_v1 }
 0x4b0   :  { %1122 = vmatpush3.bf16.msk.msra.mxu1 %vm1121_vm13, %v1120_v53  ;;  %1003 = vmatprep.mubr.msk.f32.mxu1 %vm1291_vm1, %v1289_v0 }
 0x4b1   :  { %1006 = vmatprep.subr.mxu1 %v1289_v0 }
 0x521   :  { %v592_v54 = vpop.permute.xlu0 %591 }
 0x522   :  { %v594_v55 = vadd.f32 %v592_v54, %v589_v1 }
 0x524   :  { %v682_v57 = vmul.f32 %v594_v55, %v1487_v56 }
 0x526   :  { %1004 = vmatmul.mubr.msk.f32.vlgmr.msra.gmra.mrb[6].mxu1 %vm685_vm14, %v682_v57 }
 0x527   :  { %1007 = vmatpush3.msra.mxu1 %v764_v58  ;;  %1008 = vmatprep.mubr.msk.f32.mxu1 %vm1291_vm1, %v1289_v0 }
 0x582   :  { %v672_v59 = vpop.f32.mrb[4].mxu1 }
 0x583   :  { %v674_v60 = vpop.f32.mrb[5].mxu1 }
 0x584   :  { %678 = vrot.lane.b32.xlu0 %v674_v60, %s1294_s1 }
 0x5f6   :  { %v679_v61 = vpop.permute.xlu0 %678 }
 0x5f7   :  { %v681_v62 = vmul.f32 %v679_v61, %v674_v60 }
 0x5f9   :  { %v759_v63 = vpop.f32.mrb[6].mxu1  ;;  %1009 = vmatmul.mubr.msk.f32.vlgmr.msra.gmra.mrb[8].mxu1 %vm765_vm15, %v681_v62 }
 0x5fa   :  { %v763_v2 = vadd.f32 %v759_v63, %v672_v59  ;;  %v1005_v3 = vpop.f32.mrb[7].mxu1 }
 0x6cc   :  { %v835_v4 = vpop.f32.mrb[8].mxu1 }
 0x6cd   :  { %v839_v5 = vadd.f32 %v835_v4, %v763_v2  ;;  %v1010_v56 = vpop.f32.mrb[9].mxu1 }
 0x6cf   :  { %840 = vst [vmem:[%s1509_s8] sm:$0xff] %v839_v5 }
 0x6d0   :  { %845 = vsyncpa [#allocation3], 1 }
 0x6d1   :  { %846 = vsyncpa [#allocation5], 1 }
 0x6d2   :  { %847 = vsyncpa [#allocation8], 1 }
 0x6d3   :  { %848 = vsyncpa [#allocation11], 1 }

</bundles_post_ra>
